<compile_context>
chip_gen: v6e
topology: v6e:2x2x1
jax: 0.10.0
libtpu: 0.0.40
codegen_flags: <defaults>
</compile_context>

<pallas_src>
import jax
import jax.numpy as jnp
from jax.experimental import pallas as pl
from jax.experimental.pallas import tpu as pltpu

_LANE_CANDIDATES = (512, 384, 256, 128)   # preferred lane-dense widths
_TARGET_BLOCK_BYTES = 3 << 20             # ~3 MiB per buffer (safe on all gens)


def _scale_kernel(scale_ref, x_ref, o_ref):
    # scale_ref lives in SMEM; one scalar read + VPU broadcast-multiply.
    s = scale_ref[0, 0]
    o_ref[...] = (x_ref[...] * s).astype(o_ref.dtype)


def voltage_scaler(x: jax.Array, scale) -> jax.Array:
    """Pallas implementation of VoltageScaler.forward: x * scale."""
    orig_shape = x.shape
    orig_dtype = x.dtype
    total = int(x.size)
    itemsize = jnp.dtype(orig_dtype).itemsize

    # Scalar buffer -> (1, 1) SMEM operand (f32 so the multiply is at least f32).
    scale_arr = jnp.asarray(scale, dtype=jnp.float32).reshape(1, 1)

    # --- lane-dense 2D view (prefer a free reshape, no pad/slice passes) -----
    lane = None
    for cand in _LANE_CANDIDATES:
        if total % cand == 0:
            lane = cand
            break

    if lane is not None:
        x2 = x.reshape(total // lane, lane)     # pure reshape, no HBM pass
        padded = False
    else:
        # Fallback for sizes not divisible by 128: one pad pass + tail slice.
        lane = 128
        padded_total = pl.cdiv(total, lane) * lane
        flat = jnp.pad(x.reshape(-1), (0, padded_total - total))
        x2 = flat.reshape(padded_total // lane, lane)
        padded = True

    rows = x2.shape[0]

    # --- row-block size -------------------------------------------------------
    # Sublane multiple honoring dtype packing (f32: 8, bf16: 16, int8/fp8: 32).
    sub = max(8, 32 // max(1, itemsize))
    bytes_per_row = lane * itemsize
    target_rows = max(sub, (_TARGET_BLOCK_BYTES // bytes_per_row) // sub * sub)

    if rows <= sub:
        # Too small to split into legal sub-blocks: single full-extent block.
        block_rows = rows
    else:
        # Cap at ~half the rows (rounded up to `sub`) so the grid has >= 2
        # steps -> shardable across v7x's two TensorCores; never exceed the
        # ~3 MiB VMEM target for larger inputs.
        half_rows = ((pl.cdiv(rows, 2) + sub - 1) // sub) * sub
        block_rows = min(target_rows, half_rows)

    grid_rows = pl.cdiv(rows, block_rows)

    out2 = pl.pallas_call(
        _scale_kernel,
        out_shape=jax.ShapeDtypeStruct(x2.shape, orig_dtype),
        grid=(grid_rows,),
        in_specs=[
            pl.BlockSpec(memory_space=pltpu.MemorySpace.SMEM),       # scale
            pl.BlockSpec((block_rows, lane), lambda i: (i, 0)),      # x tile
        ],
        out_specs=pl.BlockSpec((block_rows, lane), lambda i: (i, 0)),
        compiler_params=pltpu.CompilerParams(
            dimension_semantics=("parallel",),
        ),
    )(scale_arr, x2)

    if padded:
        return out2.reshape(-1)[:total].reshape(orig_shape)
    return out2.reshape(orig_shape)


if __name__ == "__main__":
    key = jax.random.PRNGKey(0)
    # Small NCHW input consistent with an SNN current tensor.
    x = jax.random.normal(key, (2, 4, 16, 16), dtype=jnp.float32)

    # Deterministic "buffer" value for the module's `scale`.
    scale = 0.5

    y = voltage_scaler(x, scale)
    jax.block_until_ready(y)

    # Correctness check against the trivial reference (x * scale buffer).
    ref = x * jnp.float32(scale)
    assert y.shape == x.shape and y.dtype == x.dtype
    assert jnp.allclose(y, ref, atol=1e-6, rtol=1e-6), "mismatch vs reference"

    print("KERNEL_OK")
</pallas_src>

<mosaic_0001>
module attributes {stable_mosaic.version = 11 : i64} {
  func.func @_scale_kernel(%arg0: i32, %arg1: memref<1x1xf32, #tpu.memory_space<smem>>, %arg2: memref<4x512xf32, #tpu.memory_space<vmem>>, %arg3: memref<4x512xf32, #tpu.memory_space<vmem>>) attributes {dimension_semantics = [#tpu.dimension_semantics<parallel>], iteration_bounds = array<i64: 1>, scalar_prefetch = 0 : i64, scratch_operands = 0 : i64, tpu.core_type = #tpu.core_type<tc>, window_params = [{transform_indices = @transform_0, window_bounds = array<i64: 1, 1>}, {transform_indices = @transform_1, window_bounds = array<i64: 4, 512>}, {transform_indices = @transform_2, window_bounds = array<i64: 4, 512>}]} {
    %c0 = arith.constant 0 : index
    %c0_0 = arith.constant 0 : index
    %0 = memref.load %arg1[%c0, %c0_0] : memref<1x1xf32, #tpu.memory_space<smem>>
    %c0_1 = arith.constant 0 : index
    %c0_2 = arith.constant 0 : index
    %1 = vector.load %arg2[%c0_1, %c0_2] : memref<4x512xf32, #tpu.memory_space<vmem>>, vector<4x512xf32>
    %2 = vector.broadcast %0 : f32 to vector<4x512xf32>
    %3 = arith.mulf %1, %2 : vector<4x512xf32>
    %c0_3 = arith.constant 0 : index
    %c0_4 = arith.constant 0 : index
    %4 = vector.load %arg3[%c0_3, %c0_4] : memref<4x512xf32, #tpu.memory_space<vmem>>, vector<4x512xf32>
    tpu.vector_store %arg3[%c0_3, %c0_4], %3 {strides = array<i32>} : memref<4x512xf32, #tpu.memory_space<vmem>>, vector<4x512xf32>,
    return
  }
  func.func @transform_0(%arg0: i32) -> (i32, i32) {
    %c0_i32 = arith.constant 0 : i32
    %c0_i32_0 = arith.constant 0 : i32
    %c0_i32_1 = arith.constant 0 : i32
    return %c0_i32, %c0_i32_0 : i32, i32
  }
  func.func @transform_1(%arg0: i32) -> (i32, i32) {
    %c0_i32 = arith.constant 0 : i32
    %c0_i32_0 = arith.constant 0 : i32
    return %arg0, %c0_i32 : i32, i32
  }
  func.func @transform_2(%arg0: i32) -> (i32, i32) {
    %c0_i32 = arith.constant 0 : i32
    %c0_i32_0 = arith.constant 0 : i32
    return %arg0, %c0_i32 : i32, i32
  }
}

</mosaic_0001>

<bundles_post_ra>
// kernel: tpu_custom_call.1
= control target key start
LH: loop header
LB: loop body
LE: loop exit
PB: predicated region body
PF: predicated region fallthrough
CT: control target
= control target key end

     0   :  { %8 = vsyncpa [#allocation4], 0  ;;  %s120_s0 = inlined_call_operand.<no memory space> [shape: f32[1,1], index: 0, kind: input, shape index: {}]   ;;  %s121_s1 = inlined_call_operand.hbm [shape: f32[4,512], index: 1, kind: input, shape index: {}]   ;;  %s122_s2 = inlined_call_operand.hbm [shape: f32[4,512], index: 2, kind: output, shape index: {}]  }
   0x1   :  { %9 = vsyncpa [#allocation5], 0  ;;  %s94_s9 = smov [#allocation3]  }
   0x2   :  { %s18_s10 = sshll.u32 %s94_s9, 4  ;;  %s19_s10 = int_to_ptr.vmem [resolvable:$true] %s18_s10 }
   0x3   :  { %s58_s11 = scalar_lea.vmem %s19_s10, 256  ;;  %p63_p1 = scmp.lt.s32.totalorder %s19_s10, %s19_s10 }
   0x4   :  { %p59_p0 = scmp.ne.s32.totalorder %s19_s10, %s58_s11  ;;  %p64_p2 = scmp.lt.s32.totalorder %s58_s11, %s58_s11 }
   0x6   :  { %p65_p3 = por %p64_p2, %p63_p1 }
   0x8   :  { %p66_p4 = pnand %p65_p3, %p59_p0 }
   0xa   :  { %69 = shalt.err (!%p66_p4)
}
   0xb   :  { %21 = dma.hbm_to_vmem [thread:$0]  %s121_s1, 256, %s19_s10, [#allocation4]  }
   0xc   :  { %90 = dma.done.wait [#allocation4], 256  }
   0xd   :  { %91 = vsyncadd [#allocation4], 4294967040  ;;  %v28_v0 = vstv %s120_s0  ;;  %s95_s16 = smov [#allocation6]   ;;  %v26_v1 = vld [vmem:[#allocation3] sm:$0xff]  ;;  %v27_v2 = vld [vmem:[#allocation3 + $0x8] sm:$0xff] }
   0xe   :  { %s39_s17 = sshll.u32 %s95_s16, 4  ;;  %v29_v3 = vmul.f32 %v28_v0, %v26_v1  ;;  %v30_v4 = vmul.f32 %v28_v0, %v27_v2  ;;  %s40_s17 = int_to_ptr.vmem [resolvable:$true] %s39_s17 }
   0xf   :  { %s70_s18 = scalar_lea.vmem %s40_s17, 256  ;;  %p75_p6 = scmp.lt.s32.totalorder %s40_s17, %s40_s17 }
  0x10   :  { %31 = vst [vmem:[#allocation6] sm:$0xff] %v29_v3  ;;  %32 = vst [vmem:[#allocation6 + $0x8] sm:$0xff] %v30_v4  ;;  %p71_p5 = scmp.ne.s32.totalorder %s40_s17, %s70_s18  ;;  %p76_p7 = scmp.lt.s32.totalorder %s70_s18, %s70_s18 }
  0x12   :  { %p77_p8 = por %p76_p7, %p75_p6 }
  0x14   :  { %p78_p9 = pnand %p77_p8, %p71_p5 }
  0x16   :  { %81 = shalt.err (!%p78_p9)
}
  0x17   :  { %42 = dma.vmem_to_hbm [thread:$0]  %s40_s17, 256, %s122_s2, [#allocation5]  }
  0x18   :  { %92 = dma.done.wait [#allocation5], 256  }
  0x19   :  { %93 = vsyncadd [#allocation5], 4294967040 }
  0x1a   :  { %46 = vsyncpa [#allocation4], 1 }
  0x1b   :  { %47 = vsyncpa [#allocation5], 1 }

</bundles_post_ra>
